<compile_context>
chip_gen: v5e
topology: v5e:2x2
jax: 0.10.0
libtpu: 0.0.40
codegen_flags: <defaults>
</compile_context>

<pallas_src>
import jax
import jax.numpy as jnp
import numpy as np
from jax.experimental import pallas as pl
from jax.experimental.pallas import tpu as pltpu

# ---- model hyper-parameters (small, consistent with EEGNet_Model config) ----
B = 2            # batch
C_EEG = 4        # num_channels (EEG electrodes)  -> H in NCHW
T = 64           # num_samples (time)             -> W in NCHW
K1 = 8           # kernel_length1
K2 = 4           # kernel_length2
POOL1 = 4        # pooling_size1
POOL2 = 2        # pooling_size2
F1 = 4
D = 2
F2 = F1 * D
NC = 3           # num_classes
T1 = T // POOL1          # 16
T2 = T1 // POOL2         # 8
LEFT1 = (K1 - 1) // 2    # PyTorch padding='same' (extra pad on the right)
LEFT2 = (K2 - 1) // 2
EPS = 1e-5

# ---- lane-dense kernel layout constants ----
TLANE = 96               # per-EEG-channel padded time lanes (>= T + K1 - 1 = 71)
NCP = 128                # logits lane-padded to a full lane tile
BTILE = 128 if B >= 128 else 8          # batch rows per grid step
B_PAD = ((B + BTILE - 1) // BTILE) * BTILE
NA = C_EEG * TLANE       # 384: input lanes  (c * TLANE + padded-time j)
NH = F2 * T              # 512: hidden lanes (m * T + t)
NZ = F2 * T1             # 128: hidden lanes (n * T1 + t1)
NBIAS = NH + NZ + NCP    # 768


def eegnet_kernel(a0_ref, wa_ref, wb_ref, wc_ref, bias_ref, out_ref):
    """Three MXU matmuls (bf16 operands, f32 accumulate) + two f32 ELUs."""
    f32 = jnp.float32
    bf16 = jnp.bfloat16
    a0 = a0_ref[...]                                               # bf16 (BTILE, NA)

    # conv1('same') + BN1 + depthwise-over-EEG-channels, fused into one matmul
    h1 = jnp.dot(a0, wa_ref[...], preferred_element_type=f32)      # (BTILE, NH)
    h1 = h1 + bias_ref[0:1, 0:NH]                                  # sublane broadcast
    h1 = jnp.where(h1 > 0, h1, jnp.exp(jnp.minimum(h1, 0.0)) - 1.0)        # ELU1

    # avgpool1 + separable depthwise conv('same') + pointwise + BN2, fused
    z = jnp.dot(h1.astype(bf16), wb_ref[...], preferred_element_type=f32)  # (BTILE, NZ)
    z = z + bias_ref[0:1, NH:NH + NZ]
    z = jnp.where(z > 0, z, jnp.exp(jnp.minimum(z, 0.0)) - 1.0)            # ELU2

    # avgpool2 + flatten + dense, fused (logits lane-padded to NCP)
    out_ref[...] = (jnp.dot(z.astype(bf16), wc_ref[...], preferred_element_type=f32)
                    + bias_ref[0:1, NH + NZ:NBIAS])


def eegnet_forward(x, kparams):
    """x: (B, 1, C_EEG, T) NCHW like PyTorch. Returns (B, NC) f32 logits."""
    wa, wb, wc, bias_row = kparams
    xs = x[:, 0, :, :].astype(jnp.float32)                         # (B, C_EEG, T)

    # Lane-dense input slab in one pad: row = batch element (padded to a full
    # sublane tile), lanes = c * TLANE + j with the signal at j in
    # [LEFT1, LEFT1+T) and zeros elsewhere (realizes conv1 'same' padding).
    a0 = jnp.pad(xs, ((0, B_PAD - B), (0, 0), (LEFT1, TLANE - LEFT1 - T)))
    a0 = a0.reshape(B_PAD, NA).astype(jnp.bfloat16)

    out = pl.pallas_call(
        eegnet_kernel,
        out_shape=jax.ShapeDtypeStruct((B_PAD, NCP), jnp.float32),
        grid=(B_PAD // BTILE,),
        in_specs=[
            pl.BlockSpec((BTILE, NA), lambda i: (i, 0)),                     # activations
            pl.BlockSpec((NA, NH), lambda i: (0, 0),
                         pipeline_mode=pl.Buffered(1)),                      # WA resident
            pl.BlockSpec((NH, NZ), lambda i: (0, 0),
                         pipeline_mode=pl.Buffered(1)),                      # WB resident
            pl.BlockSpec((NZ, NCP), lambda i: (0, 0),
                         pipeline_mode=pl.Buffered(1)),                      # WC resident
            pl.BlockSpec((1, NBIAS), lambda i: (0, 0),
                         pipeline_mode=pl.Buffered(1)),                      # bias row
        ],
        out_specs=pl.BlockSpec((BTILE, NCP), lambda i: (i, 0)),
        compiler_params=pltpu.CompilerParams(
            dimension_semantics=("parallel",)),
    )(a0, wa, wb, wc, bias_row)
    return out[:B, :NC]


def init_params(key):
    ks = jax.random.split(key, 18)
    f32 = jnp.float32
    p = {}
    p['w_conv1'] = 0.3 * jax.random.normal(ks[0], (F1, 1, 1, K1), f32)
    p['b_conv1'] = 0.1 * jax.random.normal(ks[1], (F1,), f32)
    p['bn1_gamma'] = 1.0 + 0.1 * jax.random.normal(ks[2], (F1,), f32)
    p['bn1_beta'] = 0.1 * jax.random.normal(ks[3], (F1,), f32)
    p['bn1_mean'] = 0.05 * jax.random.normal(ks[4], (F1,), f32)
    p['bn1_var'] = 1.0 + 0.1 * jnp.abs(jax.random.normal(ks[5], (F1,), f32))
    p['w_dw'] = 0.3 * jax.random.normal(ks[6], (F2, 1, C_EEG, 1), f32)
    p['b_dw'] = 0.1 * jax.random.normal(ks[7], (F2,), f32)
    p['w_sep'] = 0.3 * jax.random.normal(ks[8], (F2, 1, 1, K2), f32)
    p['b_sep'] = 0.1 * jax.random.normal(ks[9], (F2,), f32)
    p['w_pw'] = 0.3 * jax.random.normal(ks[10], (F2, F2, 1, 1), f32)
    p['b_pw'] = 0.1 * jax.random.normal(ks[11], (F2,), f32)
    p['bn2_gamma'] = 1.0 + 0.1 * jax.random.normal(ks[12], (F2,), f32)
    p['bn2_beta'] = 0.1 * jax.random.normal(ks[13], (F2,), f32)
    p['bn2_mean'] = 0.05 * jax.random.normal(ks[14], (F2,), f32)
    p['bn2_var'] = 1.0 + 0.1 * jnp.abs(jax.random.normal(ks[15], (F2,), f32))
    p['w_dense'] = 0.2 * jax.random.normal(ks[16], (NC, F2 * T2), f32)
    p['b_dense'] = 0.1 * jax.random.normal(ks[17], (NC,), f32)
    return p


def prepare_kernel_params(p):
    """Fold the whole eval-mode EEGNet into 3 bf16 matrices + 1 f32 bias row."""
    f32 = jnp.float32
    bf16 = jnp.bfloat16

    # ---- stage A: conv1 ('same', K1) + BN1 + depthwise over EEG channels ----
    scale1 = p['bn1_gamma'] / jnp.sqrt(p['bn1_var'] + EPS)
    shift1 = p['bn1_beta'] - p['bn1_mean'] * scale1
    w1f = p['w_conv1'][:, 0, 0, :] * scale1[:, None]              # (F1, K1)
    b1f = p['b_conv1'] * scale1 + shift1                          # (F1,)
    wd = p['w_dw'][:, 0, :, 0]                                    # (F2, C_EEG)
    bd = p['b_dw']                                                # (F2,)
    group = jnp.arange(F2) // D                                   # out-chan -> group

    jj = jnp.arange(TLANE)[:, None]                               # padded-time j
    tt = jnp.arange(T)[None, :]                                   # output time t
    k1 = jj - tt                                                  # tap index
    band1 = jnp.where((k1 >= 0) & (k1 < K1),
                      w1f[:, jnp.clip(k1, 0, K1 - 1)], 0.0)       # (F1, TLANE, T)
    band1_m = band1[group]                                        # (F2, TLANE, T)
    # WA[c*TLANE + j, m*T + t] = wd[m, c] * w1fold[m//D, j - t]
    wa = jnp.einsum('mc,mjt->cjmt', wd, band1_m).reshape(NA, NH).astype(bf16)
    ba = jnp.repeat(wd.sum(axis=1) * b1f[group] + bd, T)          # (NH,)

    # ---- stage B: avgpool1 + separable depthwise conv ('same', K2) + pointwise + BN2 ----
    scale2 = p['bn2_gamma'] / jnp.sqrt(p['bn2_var'] + EPS)
    shift2 = p['bn2_beta'] - p['bn2_mean'] * scale2
    wpwf = p['w_pw'][:, :, 0, 0] * scale2[:, None]                # (F2, F2) [n, m]
    bpwf = p['b_pw'] * scale2 + shift2                            # (F2,)
    ws = p['w_sep'][:, 0, 0, :]                                   # (F2, K2)
    bs = p['b_sep']                                               # (F2,)

    pool1 = (jnp.arange(T)[:, None] // POOL1 ==
             jnp.arange(T1)[None, :]).astype(f32) / POOL1         # (T, T1)
    s1 = jnp.arange(T1)[:, None]                                  # pooled time t1
    s2 = jnp.arange(T1)[None, :]                                  # output time t
    k2 = s1 - s2 + LEFT2
    sband = jnp.where((k2 >= 0) & (k2 < K2),
                      ws[:, jnp.clip(k2, 0, K2 - 1)], 0.0)        # (F2, T1, T1)
    m1 = jnp.einsum('pq,mqt->mpt', pool1, sband)                  # (F2, T, T1)
    # WB[m*T + t', n*T1 + t] = wpw_fold[n, m] * (pool1 @ sep_band)[m, t', t]
    wb = jnp.einsum('nm,mpt->mpnt', wpwf, m1).reshape(NH, NZ).astype(bf16)
    bb = jnp.repeat(wpwf @ bs + bpwf, T1)                         # (NZ,)

    # ---- stage C: avgpool2 + flatten + dense (lane-padded to NCP) ----
    pool2 = (jnp.arange(T1)[:, None] // POOL2 ==
             jnp.arange(T2)[None, :]).astype(f32) / POOL2         # (T1, T2)
    wden = p['w_dense'].reshape(NC, F2, T2)
    wc_small = jnp.einsum('pq,cnq->npc', pool2, wden).reshape(NZ, NC)
    wc = jnp.zeros((NZ, NCP), f32).at[:, :NC].set(wc_small).astype(bf16)
    bc = jnp.zeros((NCP,), f32).at[:NC].set(p['b_dense'])

    # ---- one-row f32 bias slab (sublane broadcast in-kernel is free) ----
    bias_row = jnp.concatenate([ba, bb, bc])[None, :].astype(f32)  # (1, NBIAS)

    return wa, wb, wc, bias_row


def reference_forward(x, p):
    """Pure-JAX f32 reference mirroring the PyTorch eval-mode forward."""
    xs = x[:, 0].astype(jnp.float32)
    xp = jnp.pad(xs, ((0, 0), (0, 0), (LEFT1, K1 - 1 - LEFT1)))
    win1 = jnp.stack([xp[:, :, k:k + T] for k in range(K1)], axis=-1)     # (B,C,T,K1)
    y = jnp.einsum('bctk,fk->bfct', win1, p['w_conv1'][:, 0, 0, :])
    y = y + p['b_conv1'][None, :, None, None]
    y = ((y - p['bn1_mean'][None, :, None, None])
         / jnp.sqrt(p['bn1_var'] + EPS)[None, :, None, None]
         * p['bn1_gamma'][None, :, None, None] + p['bn1_beta'][None, :, None, None])
    yr = jnp.repeat(y, D, axis=1)                                         # (B,F2,C,T)
    y = jnp.einsum('bmct,mc->bmt', yr, p['w_dw'][:, 0, :, 0]) + p['b_dw'][None, :, None]
    y = jax.nn.elu(y)
    y = y.reshape(B, F2, T1, POOL1).mean(-1)
    xp2 = jnp.pad(y, ((0, 0), (0, 0), (LEFT2, K2 - 1 - LEFT2)))
    win2 = jnp.stack([xp2[:, :, k:k + T1] for k in range(K2)], axis=-1)
    y = jnp.einsum('bmtk,mk->bmt', win2, p['w_sep'][:, 0, 0, :]) + p['b_sep'][None, :, None]
    y = jnp.einsum('nm,bmt->bnt', p['w_pw'][:, :, 0, 0], y) + p['b_pw'][None, :, None]
    y = ((y - p['bn2_mean'][None, :, None]) / jnp.sqrt(p['bn2_var'] + EPS)[None, :, None]
         * p['bn2_gamma'][None, :, None] + p['bn2_beta'][None, :, None])
    y = jax.nn.elu(y)
    y = y.reshape(B, F2, T2, POOL2).mean(-1)
    flat = y.reshape(B, F2 * T2)
    return flat @ p['w_dense'].T + p['b_dense'][None, :]


if __name__ == "__main__":
    key = jax.random.PRNGKey(0)
    k_x, k_p = jax.random.split(key)
    x = jax.random.normal(k_x, (B, 1, C_EEG, T), jnp.float32)   # NCHW, like PyTorch
    params = init_params(k_p)
    kparams = prepare_kernel_params(params)

    out = eegnet_forward(x, kparams)
    out = jax.block_until_ready(out)
    assert out.shape == (B, NC), out.shape

    ref = reference_forward(x, params)
    # Tolerance loosened for bf16 matmul operands (three chained bf16 dots,
    # f32 accumulation) vs the pure-f32 reference.
    if not np.allclose(np.asarray(out), np.asarray(ref), atol=5e-2, rtol=5e-2):
        diff = np.max(np.abs(np.asarray(out) - np.asarray(ref)))
        raise AssertionError(f"Pallas kernel mismatch vs reference, max abs diff {diff}")

    print("KERNEL_OK")
</pallas_src>

<mosaic_0001>
module attributes {stable_mosaic.version = 11 : i64} {
  func.func @eegnet_kernel(%arg0: i32, %arg1: memref<8x384xbf16, #tpu.memory_space<vmem>>, %arg2: memref<384x512xbf16, #tpu.memory_space<vmem>>, %arg3: memref<512x128xbf16, #tpu.memory_space<vmem>>, %arg4: memref<128x128xbf16, #tpu.memory_space<vmem>>, %arg5: memref<1x768xf32, #tpu.memory_space<vmem>>, %arg6: memref<8x128xf32, #tpu.memory_space<vmem>>) attributes {dimension_semantics = [#tpu.dimension_semantics<parallel>], iteration_bounds = array<i64: 1>, scalar_prefetch = 0 : i64, scratch_operands = 0 : i64, tpu.core_type = #tpu.core_type<tc>, window_params = [{transform_indices = @transform_0, window_bounds = array<i64: 8, 384>}, {pipeline_mode = #tpu.pipeline_mode<synchronous>, transform_indices = @transform_1, window_bounds = array<i64: 384, 512>}, {pipeline_mode = #tpu.pipeline_mode<synchronous>, transform_indices = @transform_2, window_bounds = array<i64: 512, 128>}, {pipeline_mode = #tpu.pipeline_mode<synchronous>, transform_indices = @transform_3, window_bounds = array<i64: 128, 128>}, {pipeline_mode = #tpu.pipeline_mode<synchronous>, transform_indices = @transform_4, window_bounds = array<i64: 1, 768>}, {transform_indices = @transform_5, window_bounds = array<i64: 8, 128>}]} {
    %c0 = arith.constant 0 : index
    %c0_0 = arith.constant 0 : index
    %0 = vector.load %arg1[%c0, %c0_0] : memref<8x384xbf16, #tpu.memory_space<vmem>>, vector<8x384xbf16>
    %c0_1 = arith.constant 0 : index
    %c0_2 = arith.constant 0 : index
    %1 = vector.load %arg2[%c0_1, %c0_2] : memref<384x512xbf16, #tpu.memory_space<vmem>>, vector<384x512xbf16>
    %cst = arith.constant dense<0.000000e+00> : vector<8x512xf32>
    %2 = tpu.matmul %0, %1, %cst {dimension_numbers = #tpu.dot_dimension_numbers<[1], [0], [0], [1], [0, 0, 1, 1], [], []>} : vector<8x384xbf16>, vector<384x512xbf16>, vector<8x512xf32> -> vector<8x512xf32>
    %c0_3 = arith.constant 0 : index
    %c0_4 = arith.constant 0 : index
    %3 = vector.load %arg5[%c0_3, %c0_4] : memref<1x768xf32, #tpu.memory_space<vmem>>, vector<1x512xf32>
    %4 = vector.broadcast %3 : vector<1x512xf32> to vector<8x512xf32>
    %5 = arith.addf %2, %4 : vector<8x512xf32>
    %cst_5 = arith.constant 0.000000e+00 : f32
    %6 = vector.broadcast %cst_5 : f32 to vector<8x512xf32>
    %7 = arith.cmpf ogt, %5, %6 : vector<8x512xf32>
    %cst_6 = arith.constant 0.000000e+00 : f32
    %8 = vector.broadcast %cst_6 : f32 to vector<8x512xf32>
    %9 = arith.minimumf %5, %8 : vector<8x512xf32>
    %10 = math.exp %9 : vector<8x512xf32>
    %cst_7 = arith.constant 1.000000e+00 : f32
    %11 = vector.broadcast %cst_7 : f32 to vector<8x512xf32>
    %12 = arith.subf %10, %11 : vector<8x512xf32>
    %13 = arith.select %7, %5, %12 : vector<8x512xi1>, vector<8x512xf32>
    %14 = arith.truncf %13 : vector<8x512xf32> to vector<8x512xbf16>
    %c0_8 = arith.constant 0 : index
    %c0_9 = arith.constant 0 : index
    %15 = vector.load %arg3[%c0_8, %c0_9] : memref<512x128xbf16, #tpu.memory_space<vmem>>, vector<512x128xbf16>
    %cst_10 = arith.constant dense<0.000000e+00> : vector<8x128xf32>
    %16 = tpu.matmul %14, %15, %cst_10 {dimension_numbers = #tpu.dot_dimension_numbers<[1], [0], [0], [1], [0, 0, 1, 1], [], []>} : vector<8x512xbf16>, vector<512x128xbf16>, vector<8x128xf32> -> vector<8x128xf32>
    %c0_11 = arith.constant 0 : index
    %c512 = arith.constant 512 : index
    %17 = vector.load %arg5[%c0_11, %c512] : memref<1x768xf32, #tpu.memory_space<vmem>>, vector<1x128xf32>
    %18 = vector.broadcast %17 : vector<1x128xf32> to vector<8x128xf32>
    %19 = arith.addf %16, %18 : vector<8x128xf32>
    %cst_12 = arith.constant 0.000000e+00 : f32
    %20 = vector.broadcast %cst_12 : f32 to vector<8x128xf32>
    %21 = arith.cmpf ogt, %19, %20 : vector<8x128xf32>
    %cst_13 = arith.constant 0.000000e+00 : f32
    %22 = vector.broadcast %cst_13 : f32 to vector<8x128xf32>
    %23 = arith.minimumf %19, %22 : vector<8x128xf32>
    %24 = math.exp %23 : vector<8x128xf32>
    %cst_14 = arith.constant 1.000000e+00 : f32
    %25 = vector.broadcast %cst_14 : f32 to vector<8x128xf32>
    %26 = arith.subf %24, %25 : vector<8x128xf32>
    %27 = arith.select %21, %19, %26 : vector<8x128xi1>, vector<8x128xf32>
    %28 = arith.truncf %27 : vector<8x128xf32> to vector<8x128xbf16>
    %c0_15 = arith.constant 0 : index
    %c0_16 = arith.constant 0 : index
    %29 = vector.load %arg4[%c0_15, %c0_16] : memref<128x128xbf16, #tpu.memory_space<vmem>>, vector<128x128xbf16>
    %cst_17 = arith.constant dense<0.000000e+00> : vector<8x128xf32>
    %30 = tpu.matmul %28, %29, %cst_17 {dimension_numbers = #tpu.dot_dimension_numbers<[1], [0], [0], [1], [0, 0, 1, 1], [], []>} : vector<8x128xbf16>, vector<128x128xbf16>, vector<8x128xf32> -> vector<8x128xf32>
    %c0_18 = arith.constant 0 : index
    %c640 = arith.constant 640 : index
    %31 = vector.load %arg5[%c0_18, %c640] : memref<1x768xf32, #tpu.memory_space<vmem>>, vector<1x128xf32>
    %32 = vector.broadcast %31 : vector<1x128xf32> to vector<8x128xf32>
    %33 = arith.addf %30, %32 : vector<8x128xf32>
    %c0_19 = arith.constant 0 : index
    %c0_20 = arith.constant 0 : index
    %34 = vector.load %arg6[%c0_19, %c0_20] : memref<8x128xf32, #tpu.memory_space<vmem>>, vector<8x128xf32>
    tpu.vector_store %arg6[%c0_19, %c0_20], %33 {strides = array<i32>} : memref<8x128xf32, #tpu.memory_space<vmem>>, vector<8x128xf32>,
    return
  }
  func.func @transform_0(%arg0: i32) -> (i32, i32) {
    %c0_i32 = arith.constant 0 : i32
    %c0_i32_0 = arith.constant 0 : i32
    return %arg0, %c0_i32 : i32, i32
  }
  func.func @transform_1(%arg0: i32) -> (i32, i32) {
    %c0_i32 = arith.constant 0 : i32
    %c0_i32_0 = arith.constant 0 : i32
    %c0_i32_1 = arith.constant 0 : i32
    return %c0_i32, %c0_i32_0 : i32, i32
  }
  func.func @transform_2(%arg0: i32) -> (i32, i32) {
    %c0_i32 = arith.constant 0 : i32
    %c0_i32_0 = arith.constant 0 : i32
    %c0_i32_1 = arith.constant 0 : i32
    return %c0_i32, %c0_i32_0 : i32, i32
  }
  func.func @transform_3(%arg0: i32) -> (i32, i32) {
    %c0_i32 = arith.constant 0 : i32
    %c0_i32_0 = arith.constant 0 : i32
    %c0_i32_1 = arith.constant 0 : i32
    return %c0_i32, %c0_i32_0 : i32, i32
  }
  func.func @transform_4(%arg0: i32) -> (i32, i32) {
    %c0_i32 = arith.constant 0 : i32
    %c0_i32_0 = arith.constant 0 : i32
    %c0_i32_1 = arith.constant 0 : i32
    return %c0_i32, %c0_i32_0 : i32, i32
  }
  func.func @transform_5(%arg0: i32) -> (i32, i32) {
    %c0_i32 = arith.constant 0 : i32
    %c0_i32_0 = arith.constant 0 : i32
    return %arg0, %c0_i32 : i32, i32
  }
}

</mosaic_0001>

<bundles_post_ra>
// kernel: tpu_custom_call.1
= control target key start
LH: loop header
LB: loop body
LE: loop exit
PB: predicated region body
PF: predicated region fallthrough
CT: control target
= control target key end

     0   :  { %10 = vsyncpa [#allocation3], 0  ;;  %s2239_s0 = inlined_call_operand.hbm [shape: bf16[8,384], index: 0, kind: input, shape index: {}]   ;;  %s2240_s1 = inlined_call_operand.hbm [shape: bf16[384,512], index: 1, kind: input, shape index: {}]   ;;  %s2241_s2 = inlined_call_operand.hbm [shape: bf16[512,128], index: 2, kind: input, shape index: {}]   ;;  %s2242_s3 = inlined_call_operand.hbm [shape: bf16[128,128], index: 3, kind: input, shape index: {}]   ;;  %s2243_s4 = inlined_call_operand.hbm [shape: f32[1,768], index: 4, kind: input, shape index: {}]   ;;  %s2244_s5 = inlined_call_operand.hbm [shape: f32[8,128], index: 5, kind: output, shape index: {}]  }
   0x1   :  { %11 = vsyncpa [#allocation6], 0 }
   0x2   :  { %12 = vsyncpa [#allocation9], 0  ;;  %s29_s20 = sshll.u32 %s2240_s1, 4  ;;  %s30_s20 = int_to_ptr.hbm [resolvable:$true] %s29_s20 }
   0x3   :  { %13 = vsyncpa [#allocation4], 0  ;;  %s2157_s21 = smov [#allocation5]   ;;  %s2158_s23 = smov 256  }
   0x4   :  { %s31_s22 = sshll.u32 %s2157_s21, 4  ;;  %s2159_s24 = smov 16   ;;  %s32_s22 = int_to_ptr.vmem [resolvable:$true] %s31_s22 }
   0x5   :  { %37 = dma.hbm_to_vmem [thread:$0]  %s30_s20, 12288, %s32_s22, [#allocation6], %s2158_s23, %s2158_s23, %s2159_s24  }
   0x6   :  { %s55_s27 = sshll.u32 %s2242_s3, 4  ;;  %s2160_s28 = smov [#allocation8]   ;;  %s56_s27 = int_to_ptr.hbm [resolvable:$true] %s55_s27 }
   0x7   :  { %s57_s29 = sshll.u32 %s2160_s28, 4  ;;  %s19_s7 = sshll.u32 %s2239_s0, 4  ;;  %s58_s29 = int_to_ptr.vmem [resolvable:$true] %s57_s29  ;;  %s20_s7 = int_to_ptr.hbm [resolvable:$true] %s19_s7 }
   0x8   :  { %s2161_s1 = smov 64   ;;  %s2162_s8 = smov 4  }
   0x9   :  { %63 = dma.hbm_to_vmem [thread:$0]  %s56_s27, 1024, %s58_s29, [#allocation9], %s2161_s1, %s2161_s1, %s2162_s8  }
   0xa   :  { %s42_s11 = sshll.u32 %s2241_s2, 4  ;;  %s2163_s12 = smov [#allocation2]   ;;  %s43_s11 = int_to_ptr.hbm [resolvable:$true] %s42_s11 }
   0xb   :  { %s21_s13 = sshll.u32 %s2163_s12, 4  ;;  %s2164_s3 = smov [#allocation7]   ;;  %s22_s13 = int_to_ptr.vmem [resolvable:$true] %s21_s13 }
   0xc   :  { %24 = dma.hbm_to_vmem [thread:$0]  %s20_s7, 192, %s22_s13, [#allocation3]  }
   0xd   :  { %s44_s14 = sshll.u32 %s2164_s3, 4  ;;  %s69_s0 = sshll.u32 %s2243_s4, 4  ;;  %s45_s14 = int_to_ptr.vmem [resolvable:$true] %s44_s14  ;;  %s70_s0 = int_to_ptr.hbm [resolvable:$true] %s69_s0 }
   0xe   :  { %50 = dma.hbm_to_vmem [thread:$0]  %s43_s11, 4096, %s45_s14, [#allocation6], %s2161_s1, %s2161_s1, %s2162_s8  }
   0xf   :  { %s2165_s17 = smov [#allocation10]  }
  0x10   :  { %s71_s18 = sshll.u32 %s2165_s17, 4  ;;  %s72_s18 = int_to_ptr.vmem [resolvable:$true] %s71_s18 }
  0x11   :  { %74 = dma.hbm_to_vmem [thread:$0]  %s70_s0, 96, %s72_s18, [#allocation9]  }
  0x12   :  { %2149 = dma.done.wait [#allocation3], 192  }
  0x13   :  { %2150 = vsyncadd [#allocation3], 4294967104 }
  0x14   :  { %2151 = dma.done.wait [#allocation6], 16384  }
  0x15   :  { %2152 = vsyncadd [#allocation6], 4294950912 }
  0x16   :  { %2153 = dma.done.wait [#allocation9], 1120  }
  0x17   :  { %2154 = vsyncadd [#allocation9], 4294966176  ;;  %v1412_v0 = vld [vmem:[#allocation5 + $0xe0] sm:$0xf]  ;;  %v1877_v1 = vld [vmem:[#allocation5 + $0xec] sm:$0xf0] }
  0x18   :  { %v1540_v2 = vld [vmem:[#allocation5 + $0x1e0] sm:$0xf]  ;;  %v1413_v3 = vor.u32 %v1877_v1, %v1412_v0  ;;  %v1909_v4 = vld [vmem:[#allocation5 + $0x1ec] sm:$0xf0]  ;;  %v1875_v9 = vld [vmem:[#allocation5 + $0xe4] sm:$0xf] }
  0x19   :  { %v1668_v5 = vld [vmem:[#allocation5 + $0x2e0] sm:$0xf]  ;;  %v1941_v6 = vld [vmem:[#allocation5 + $0x2ec] sm:$0xf0]  ;;  %v1541_v7 = vor.u32 %v1909_v4, %v1540_v2  ;;  %v1414_v10 = vld [vmem:[#allocation5 + $0xf0] sm:$0xf0] }
  0x1a   :  { %v1669_v8 = vor.u32 %v1941_v6, %v1668_v5  ;;  %v1396_v11 = vld [vmem:[#allocation5 + $0xc0] sm:$0xf]  ;;  %694 = vmatpush.bf16.msra.mxu0 %v1413_v3  ;;  %v1417_v12 = vor.u32 %v1875_v9, %v1414_v10  ;;  %v1873_v13 = vld [vmem:[#allocation5 + $0xcc] sm:$0xf0]  ;;  %v1871_v20 = vld [vmem:[#allocation5 + $0xc4] sm:$0xf] }
  0x1b   :  { %v1524_v14 = vld [vmem:[#allocation5 + $0x1c0] sm:$0xf]  ;;  %v1905_v15 = vld [vmem:[#allocation5 + $0x1cc] sm:$0xf0]  ;;  %707 = vmatpush.bf16.msra.mxu1 %v1541_v7  ;;  %v1397_v16 = vor.u32 %v1873_v13, %v1396_v11  ;;  %v1398_v22 = vld [vmem:[#allocation5 + $0xd0] sm:$0xf0] }
  0x1c   :  { %720 = vmatpush.bf16.msra.mxu2 %v1669_v8  ;;  %v1525_v17 = vor.u32 %v1905_v15, %v1524_v14  ;;  %v1652_v18 = vld [vmem:[#allocation5 + $0x2c0] sm:$0xf]  ;;  %v1937_v19 = vld [vmem:[#allocation5 + $0x2cc] sm:$0xf0]  ;;  %733 = vmatpush.bf16.msra.mxu3 %v1417_v12  ;;  %v1401_v25 = vor.u32 %v1871_v20, %v1398_v22  ;;  %v1867_v31 = vld [vmem:[#allocation5 + $0xa4] sm:$0xf] }
  0x1d   :  { %v1653_v21 = vor.u32 %v1937_v19, %v1652_v18  ;;  %v1380_v23 = vld [vmem:[#allocation5 + $0xa0] sm:$0xf]  ;;  %v1869_v24 = vld [vmem:[#allocation5 + $0xac] sm:$0xf0]  ;;  %v1382_v32 = vld [vmem:[#allocation5 + $0xb0] sm:$0xf0] }
  0x1e   :  { %v1508_v26 = vld [vmem:[#allocation5 + $0x1a0] sm:$0xf]  ;;  %v1901_v27 = vld [vmem:[#allocation5 + $0x1ac] sm:$0xf0]  ;;  %695 = vmatpush.bf16.msra.mxu0 %v1397_v16  ;;  %v1381_v29 = vor.u32 %v1869_v24, %v1380_v23  ;;  %v1385_v38 = vor.u32 %v1867_v31, %v1382_v32  ;;  %v1863_v42 = vld [vmem:[#allocation5 + $0x84] sm:$0xf] }
  0x1f   :  { %v1636_v28 = vld [vmem:[#allocation5 + $0x2a0] sm:$0xf]  ;;  %v1933_v30 = vld [vmem:[#allocation5 + $0x2ac] sm:$0xf0]  ;;  %708 = vmatpush.bf16.msra.mxu1 %v1525_v17  ;;  %v1509_v33 = vor.u32 %v1901_v27, %v1508_v26  ;;  %v1366_v43 = vld [vmem:[#allocation5 + $0x90] sm:$0xf0] }
  0x20   :  { %721 = vmatpush.bf16.msra.mxu2 %v1653_v21  ;;  %v1637_v34 = vor.u32 %v1933_v30, %v1636_v28  ;;  %v1364_v35 = vld [vmem:[#allocation5 + $0x80] sm:$0xf]  ;;  %v1865_v36 = vld [vmem:[#allocation5 + $0x8c] sm:$0xf0]  ;;  %734 = vmatpush.bf16.msra.mxu3 %v1401_v25  ;;  %v1369_v50 = vor.u32 %v1863_v42, %v1366_v43  ;;  %v1859_v54 = vld [vmem:[#allocation5 + $0x64] sm:$0xf] }
  0x21   :  { %v1492_v37 = vld [vmem:[#allocation5 + $0x180] sm:$0xf]  ;;  %v1897_v39 = vld [vmem:[#allocation5 + $0x18c] sm:$0xf0]  ;;  %v1365_v44 = vor.u32 %v1865_v36, %v1364_v35  ;;  %v1350_v55 = vld [vmem:[#allocation5 + $0x70] sm:$0xf0] }
  0x22   :  { %v1620_v40 = vld [vmem:[#allocation5 + $0x280] sm:$0xf]  ;;  %v1929_v41 = vld [vmem:[#allocation5 + $0x28c] sm:$0xf0]  ;;  %696 = vmatpush.bf16.msra.mxu0 %v1381_v29  ;;  %v1493_v45 = vor.u32 %v1897_v39, %v1492_v37  ;;  %v1353_v62 = vor.u32 %v1859_v54, %v1350_v55  ;;  %v1855_v2 = vld [vmem:[#allocation5 + $0x44] sm:$0xf] }
  0x23   :  { %709 = vmatpush.bf16.msra.mxu1 %v1509_v33  ;;  %v1621_v46 = vor.u32 %v1929_v41, %v1620_v40  ;;  %v1348_v47 = vld [vmem:[#allocation5 + $0x60] sm:$0xf]  ;;  %v1861_v48 = vld [vmem:[#allocation5 + $0x6c] sm:$0xf0]  ;;  %v1334_v3 = vld [vmem:[#allocation5 + $0x50] sm:$0xf0] }
  0x24   :  { %722 = vmatpush.bf16.msra.mxu2 %v1637_v34  ;;  %v1476_v49 = vld [vmem:[#allocation5 + $0x160] sm:$0xf]  ;;  %735 = vmatpush.bf16.msra.mxu3 %v1385_v38  ;;  %v1893_v51 = vld [vmem:[#allocation5 + $0x16c] sm:$0xf0]  ;;  %v1349_v56 = vor.u32 %v1861_v48, %v1348_v47  ;;  %v1337_v10 = vor.u32 %v1855_v2, %v1334_v3  ;;  %v1851_v14 = vld [vmem:[#allocation5 + $0x24] sm:$0xf] }
  0x25   :  { %v1604_v52 = vld [vmem:[#allocation5 + $0x260] sm:$0xf]  ;;  %v1925_v53 = vld [vmem:[#allocation5 + $0x26c] sm:$0xf0]  ;;  %v1477_v57 = vor.u32 %v1893_v51, %v1476_v49  ;;  %v1318_v15 = vld [vmem:[#allocation5 + $0x30] sm:$0xf0] }
  0x26   :  { %697 = vmatpush.bf16.msra.mxu0 %v1365_v44  ;;  %v1605_v58 = vor.u32 %v1925_v53, %v1604_v52  ;;  %v1332_v59 = vld [vmem:[#allocation5 + $0x40] sm:$0xf]  ;;  %v1857_v60 = vld [vmem:[#allocation5 + $0x4c] sm:$0xf0]  ;;  %v1321_v25 = vor.u32 %v1851_v14, %v1318_v15  ;;  %v1847_v26 = vld [vmem:[#allocation5 + $0x4] sm:$0xf] }
  0x27   :  { %710 = vmatpush.bf16.msra.mxu1 %v1493_v45  ;;  %v1460_v61 = vld [vmem:[#allocation5 + $0x140] sm:$0xf]  ;;  %v1889_v63 = vld [vmem:[#allocation5 + $0x14c] sm:$0xf0]  ;;  %v1333_v4 = vor.u32 %v1857_v60, %v1332_v59  ;;  %v1302_v27 = vld [vmem:[#allocation5 + $0x10] sm:$0xf0] }
  0x28   :  { %723 = vmatpush.bf16.msra.mxu2 %v1621_v46  ;;  %736 = vmatpush.bf16.msra.mxu3 %v1369_v50  ;;  %v1588_v0 = vld [vmem:[#allocation5 + $0x240] sm:$0xf]  ;;  %v1921_v1 = vld [vmem:[#allocation5 + $0x24c] sm:$0xf0]  ;;  %v1461_v5 = vor.u32 %v1889_v63, %v1460_v61  ;;  %v1907_v28 = vld [vmem:[#allocation5 + $0x1e4] sm:$0xf]  ;;  %v1305_v41 = vor.u32 %v1847_v26, %v1302_v27 }
  0x29   :  { %v1589_v6 = vor.u32 %v1921_v1, %v1588_v0  ;;  %v1316_v7 = vld [vmem:[#allocation5 + $0x20] sm:$0xf]  ;;  %v1853_v8 = vld [vmem:[#allocation5 + $0x2c] sm:$0xf0]  ;;  %v1542_v29 = vld [vmem:[#allocation5 + $0x1f0] sm:$0xf0] }
  0x2a   :  { %698 = vmatpush.bf16.msra.mxu0 %v1349_v56  ;;  %v1444_v9 = vld [vmem:[#allocation5 + $0x120] sm:$0xf]  ;;  %v1885_v11 = vld [vmem:[#allocation5 + $0x12c] sm:$0xf0]  ;;  %v1317_v16 = vor.u32 %v1853_v8, %v1316_v7  ;;  %v1939_v30 = vld [vmem:[#allocation5 + $0x2e4] sm:$0xf]  ;;  %v1545_v42 = vor.u32 %v1907_v28, %v1542_v29 }
  0x2b   :  { %711 = vmatpush.bf16.msra.mxu1 %v1477_v57  ;;  %v1572_v12 = vld [vmem:[#allocation5 + $0x220] sm:$0xf]  ;;  %v1917_v13 = vld [vmem:[#allocation5 + $0x22c] sm:$0xf0]  ;;  %v1445_v20 = vor.u32 %v1885_v11, %v1444_v9  ;;  %v96_v31 = vld [vmem:[#allocation2 + $0x8] sm:$0xf] }
  0x2c   :  { %724 = vmatpush.bf16.msra.mxu2 %v1605_v58  ;;  %737 = vmatpush.bf16.msra.mxu3 %v1353_v62  ;;  %v1300_v17 = vld [vmem:[#allocation5] sm:$0xf]  ;;  %v1849_v18 = vld [vmem:[#allocation5 + $0xc] sm:$0xf0]  ;;  %v1573_v21 = vor.u32 %v1917_v13, %v1572_v12  ;;  %v1670_v33 = vld [vmem:[#allocation5 + $0x2f0] sm:$0xf0]  ;;  %v207_v36 = vunpack.c.l.b16 %v96_v31 }
  0x2d   :  { %v1428_v19 = vld [vmem:[#allocation5 + $0x100] sm:$0xf]  ;;  %v1881_v22 = vld [vmem:[#allocation5 + $0x10c] sm:$0xf0]  ;;  %v1301_v32 = vor.u32 %v1849_v18, %v1300_v17  ;;  %v1420_v34 = vld [vmem:[#allocation5 + $0xe8] sm:$0xf]  ;;  %v1673_v44 = vor.u32 %v1939_v30, %v1670_v33 }
  0x2e   :  { %699 = vmatpush.bf16.msra.mxu0 %v1333_v4  ;;  %v1556_v23 = vld [vmem:[#allocation5 + $0x200] sm:$0xf]  ;;  %v1913_v24 = vld [vmem:[#allocation5 + $0x20c] sm:$0xf0]  ;;  %v1878_v35 = vld [vmem:[#allocation5 + $0xf4] sm:$0xf0]  ;;  %v1429_v37 = vor.u32 %v1881_v22, %v1428_v19  ;;  %v2212_v55 = vpack.c.b16 %v207_v36, %v207_v36 }
  0x2f   :  { %712 = vmatpush.bf16.msra.mxu1 %v1461_v5  ;;  %v1557_v38 = vor.u32 %v1913_v24, %v1556_v23  ;;  %v1548_v39 = vld [vmem:[#allocation5 + $0x1e8] sm:$0xf]  ;;  %v1910_v40 = vld [vmem:[#allocation5 + $0x1f4] sm:$0xf0]  ;;  %v1421_v45 = vor.u32 %v1878_v35, %v1420_v34  ;;  %v1903_v46 = vld [vmem:[#allocation5 + $0x1c4] sm:$0xf] }
  0x30   :  { %725 = vmatpush.bf16.msra.mxu2 %v1589_v6  ;;  %738 = vmatpush.bf16.msra.mxu3 %v1337_v10  ;;  %v95_v43 = vld [vmem:[#allocation2] sm:$0xff]  ;;  %v1935_v48 = vld [vmem:[#allocation5 + $0x2c4] sm:$0xf]  ;;  %v1549_v51 = vor.u32 %v1910_v40, %v1548_v39  ;;  %v1404_v53 = vld [vmem:[#allocation5 + $0xc8] sm:$0xf]  ;;  %s2166_s2 = smov [#allocation11]  }
  0x31   :  { %v1526_v47 = vld [vmem:[#allocation5 + $0x1d0] sm:$0xf0]  ;;  %v205_v49 = vunpack.c.l.b16 %v95_v43  ;;  %v206_v50 = vunpack.c.h.b16 %v95_v43  ;;  %v1874_v54 = vld [vmem:[#allocation5 + $0xd4] sm:$0xf0]  ;;  %v1532_v56 = vld [vmem:[#allocation5 + $0x1c8] sm:$0xf] }
  0x32   :  { %700 = vmatpush.bf16.msra.mxu0 %v1317_v16  ;;  %v1654_v52 = vld [vmem:[#allocation5 + $0x2d0] sm:$0xf0]  ;;  %v1906_v57 = vld [vmem:[#allocation5 + $0x1d4] sm:$0xf0]  ;;  %v1529_v60 = vor.u32 %v1903_v46, %v1526_v47  ;;  %v1405_v62 = vor.u32 %v1874_v54, %v1404_v53  ;;  %v1899_v63 = vld [vmem:[#allocation5 + $0x1a4] sm:$0xf] }
  0x33   :  { %713 = vmatpush.bf16.msra.mxu1 %v1445_v20  ;;  %v2214_v58 = vpack.c.b16 %v205_v49, %v205_v49  ;;  %v2216_v59 = vpack.c.b16 %v206_v50, %v206_v50  ;;  %v1657_v61 = vor.u32 %v1935_v48, %v1654_v52  ;;  %v1510_v0 = vld [vmem:[#allocation5 + $0x1b0] sm:$0xf0]  ;;  %v1931_v1 = vld [vmem:[#allocation5 + $0x2a4] sm:$0xf]  ;;  %v1533_v2 = vor.u32 %v1906_v57, %v1532_v56  ;;  %v1388_v4 = vld [vmem:[#allocation5 + $0xa8] sm:$0xf] }
  0x34   :  { %726 = vmatpush.bf16.msra.mxu2 %v1573_v21  ;;  %739 = vmatpush.bf16.msra.mxu3 %v1321_v25  ;;  %v1638_v3 = vld [vmem:[#allocation5 + $0x2b0] sm:$0xf0]  ;;  %v1870_v5 = vld [vmem:[#allocation5 + $0xb4] sm:$0xf0]  ;;  %v1516_v6 = vld [vmem:[#allocation5 + $0x1a8] sm:$0xf]  ;;  %v1513_v8 = vor.u32 %v1899_v63, %v1510_v0 }
  0x35   :  { %v1902_v7 = vld [vmem:[#allocation5 + $0x1b4] sm:$0xf0]  ;;  %v1641_v9 = vor.u32 %v1931_v1, %v1638_v3  ;;  %v1389_v10 = vor.u32 %v1870_v5, %v1388_v4  ;;  %v1895_v11 = vld [vmem:[#allocation5 + $0x184] sm:$0xf]  ;;  %v1494_v12 = vld [vmem:[#allocation5 + $0x190] sm:$0xf0] }
  0x36   :  { %701 = vmatpush.bf16.msra.mxu0 %v1301_v32  ;;  %v1927_v13 = vld [vmem:[#allocation5 + $0x284] sm:$0xf]  ;;  %v1517_v14 = vor.u32 %v1902_v7, %v1516_v6  ;;  %v1622_v15 = vld [vmem:[#allocation5 + $0x290] sm:$0xf0]  ;;  %v1372_v16 = vld [vmem:[#allocation5 + $0x88] sm:$0xf]  ;;  %v1497_v20 = vor.u32 %v1895_v11, %v1494_v12 }
  0x37   :  { %714 = vmatpush.bf16.msra.mxu1 %v1429_v37  ;;  %v1866_v17 = vld [vmem:[#allocation5 + $0x94] sm:$0xf0]  ;;  %v1500_v18 = vld [vmem:[#allocation5 + $0x188] sm:$0xf]  ;;  %v1625_v21 = vor.u32 %v1927_v13, %v1622_v15  ;;  %v1891_v23 = vld [vmem:[#allocation5 + $0x164] sm:$0xf] }
  0x38   :  { %727 = vmatpush.bf16.msra.mxu2 %v1557_v38  ;;  %740 = vmatpush.bf16.msra.mxu3 %v1305_v41  ;;  %v1898_v19 = vld [vmem:[#allocation5 + $0x194] sm:$0xf0]  ;;  %v1373_v22 = vor.u32 %v1866_v17, %v1372_v16  ;;  %v1478_v24 = vld [vmem:[#allocation5 + $0x170] sm:$0xf0]  ;;  %v1923_v25 = vld [vmem:[#allocation5 + $0x264] sm:$0xf] }
  0x39   :  { %702 = vmatmul.bf16.vlgmr.msra.gmra.mxu0 %v2214_v58  ;;  %v1501_v26 = vor.u32 %v1898_v19, %v1500_v18  ;;  %v1606_v27 = vld [vmem:[#allocation5 + $0x270] sm:$0xf0]  ;;  %v1356_v28 = vld [vmem:[#allocation5 + $0x68] sm:$0xf]  ;;  %v1862_v29 = vld [vmem:[#allocation5 + $0x74] sm:$0xf0]  ;;  %v1481_v32 = vor.u32 %v1891_v23, %v1478_v24 }
  0x3a   :  { %746 = vmatpush.bf16.msrb.mxu0 %v1545_v42  ;;  %715 = vmatmul.bf16.vlgmr.msra.gmra.mxu1 %v2216_v59  ;;  %v1484_v30 = vld [vmem:[#allocation5 + $0x168] sm:$0xf]  ;;  %v1894_v31 = vld [vmem:[#allocation5 + $0x174] sm:$0xf0]  ;;  %v1609_v33 = vor.u32 %v1923_v25, %v1606_v27  ;;  %v1357_v34 = vor.u32 %v1862_v29, %v1356_v28  ;;  %v1887_v35 = vld [vmem:[#allocation5 + $0x144] sm:$0xf] }
  0x3b   :  { %759 = vmatpush.bf16.msrb.mxu1 %v1673_v44  ;;  %728 = vmatmul.bf16.vlgmr.msra.gmra.mxu2 %v2212_v55  ;;  %v1462_v36 = vld [vmem:[#allocation5 + $0x150] sm:$0xf0]  ;;  %v1919_v37 = vld [vmem:[#allocation5 + $0x244] sm:$0xf]  ;;  %v1485_v38 = vor.u32 %v1894_v31, %v1484_v30  ;;  %v1340_v40 = vld [vmem:[#allocation5 + $0x48] sm:$0xf] }
  0x3c   :  { %772 = vmatpush.bf16.msrb.mxu2 %v1421_v45  ;;  %785 = vmatpush.bf16.msrb.mxu3 %v1549_v51  ;;  %v1590_v39 = vld [vmem:[#allocation5 + $0x250] sm:$0xf0]  ;;  %v1858_v41 = vld [vmem:[#allocation5 + $0x54] sm:$0xf0]  ;;  %v1468_v42 = vld [vmem:[#allocation5 + $0x148] sm:$0xf]  ;;  %v1465_v44 = vor.u32 %v1887_v35, %v1462_v36 }
  0x3d   :  { %741 = vmatmul.bf16.vlgmr.msra.gmra.mxu3 %v2214_v58  ;;  %v1890_v43 = vld [vmem:[#allocation5 + $0x154] sm:$0xf0]  ;;  %v1593_v45 = vor.u32 %v1919_v37, %v1590_v39  ;;  %v1341_v46 = vor.u32 %v1858_v41, %v1340_v40  ;;  %v1883_v47 = vld [vmem:[#allocation5 + $0x124] sm:$0xf]  ;;  %v1446_v48 = vld [vmem:[#allocation5 + $0x130] sm:$0xf0] }
  0x3e   :  { %747 = vmatpush.bf16.msrb.mxu0 %v1529_v60  ;;  %v1915_v49 = vld [vmem:[#allocation5 + $0x224] sm:$0xf]  ;;  %v1469_v50 = vor.u32 %v1890_v43, %v1468_v42  ;;  %v1574_v51 = vld [vmem:[#allocation5 + $0x230] sm:$0xf0]  ;;  %v1324_v52 = vld [vmem:[#allocation5 + $0x28] sm:$0xf]  ;;  %v1449_v57 = vor.u32 %v1883_v47, %v1446_v48 }
  0x3f   :  { %760 = vmatpush.bf16.msrb.mxu1 %v1657_v61  ;;  %v1854_v53 = vld [vmem:[#allocation5 + $0x34] sm:$0xf0]  ;;  %v1452_v54 = vld [vmem:[#allocation5 + $0x128] sm:$0xf]  ;;  %v1879_v60 = vld [vmem:[#allocation5 + $0x104] sm:$0xf] }
  0x40   :  { %773 = vmatpush.bf16.msrb.mxu2 %v1405_v62  ;;  %786 = vmatpush.bf16.msrb.mxu3 %v1533_v2  ;;  %v1886_v56 = vld [vmem:[#allocation5 + $0x134] sm:$0xf0]  ;;  %v1430_v61 = vld [vmem:[#allocation5 + $0x110] sm:$0xf0]  ;;  %v1577_v62 = vor.u32 %v1915_v49, %v1574_v51  ;;  %v1325_v63 = vor.u32 %v1854_v53, %v1324_v52  ;;  %v1911_v0 = vld [vmem:[#allocation5 + $0x204] sm:$0xf] }
  0x41   :  { %v1558_v1 = vld [vmem:[#allocation5 + $0x210] sm:$0xf0]  ;;  %v1308_v2 = vld [vmem:[#allocation5 + $0x8] sm:$0xf]  ;;  %v1453_v3 = vor.u32 %v1886_v56, %v1452_v54  ;;  %v1850_v4 = vld [vmem:[#allocation5 + $0x14] sm:$0xf0] }
  0x42   :  { %748 = vmatpush.bf16.msrb.mxu0 %v1513_v8  ;;  %v1436_v5 = vld [vmem:[#allocation5 + $0x108] sm:$0xf]  ;;  %v1882_v6 = vld [vmem:[#allocation5 + $0x114] sm:$0xf0]  ;;  %v1422_v11 = vld [vmem:[#allocation5 + $0xf8] sm:$0xf0]  ;;  %v1309_v15 = vor.u32 %v1850_v4, %v1308_v2 }
  0x43   :  { %761 = vmatpush.bf16.msrb.mxu1 %v1641_v9  ;;  %v1676_v7 = vld [vmem:[#allocation5 + $0x2e8] sm:$0xf]  ;;  %v1942_v8 = vld [vmem:[#allocation5 + $0x2f4] sm:$0xf0]  ;;  %v1876_v9 = vld [vmem:[#allocation5 + $0xec] sm:$0xf]  ;;  %v1437_v18 = vor.u32 %v1882_v6, %v1436_v5 }
  0x44   :  { %774 = vmatpush.bf16.msrb.mxu2 %v1389_v10  ;;  %787 = vmatpush.bf16.msrb.mxu3 %v1517_v14  ;;  %v1433_v10 = vor.u32 %v1879_v60, %v1430_v61  ;;  %v1908_v12 = vld [vmem:[#allocation5 + $0x1ec] sm:$0xf]  ;;  %v1550_v13 = vld [vmem:[#allocation5 + $0x1f8] sm:$0xf0]  ;;  %v1561_v14 = vor.u32 %v1911_v0, %v1558_v1  ;;  %v1677_v19 = vor.u32 %v1942_v8, %v1676_v7  ;;  %v1938_v23 = vld [vmem:[#allocation5 + $0x2d4] sm:$0xf0] }
  0x45   :  { %v1940_v16 = vld [vmem:[#allocation5 + $0x2ec] sm:$0xf]  ;;  %v1678_v17 = vld [vmem:[#allocation5 + $0x2f8] sm:$0xf0]  ;;  %v1934_v35 = vld [vmem:[#allocation5 + $0x2b4] sm:$0xf0] }
  0x46   :  { %749 = vmatpush.bf16.msrb.mxu0 %v1497_v20  ;;  %v1425_v20 = vor.u32 %v1876_v9, %v1422_v11  ;;  %v1872_v24 = vld [vmem:[#allocation5 + $0xcc] sm:$0xf]  ;;  %v1681_v25 = vor.u32 %v1940_v16, %v1678_v17  ;;  %v1534_v28 = vld [vmem:[#allocation5 + $0x1d8] sm:$0xf0]  ;;  %v1930_v47 = vld [vmem:[#allocation5 + $0x294] sm:$0xf0] }
  0x47   :  { %762 = vmatpush.bf16.msrb.mxu1 %v1625_v21  ;;  %v1553_v21 = vor.u32 %v1908_v12, %v1550_v13  ;;  %v1904_v27 = vld [vmem:[#allocation5 + $0x1cc] sm:$0xf]  ;;  %v1662_v30 = vld [vmem:[#allocation5 + $0x2d8] sm:$0xf0]  ;;  %v1612_v61 = vld [vmem:[#allocation5 + $0x268] sm:$0xf] }
  0x48   :  { %775 = vmatpush.bf16.msrb.mxu2 %v1373_v22  ;;  %788 = vmatpush.bf16.msrb.mxu3 %v1501_v26  ;;  %v1660_v22 = vld [vmem:[#allocation5 + $0x2c8] sm:$0xf]  ;;  %v1406_v26 = vld [vmem:[#allocation5 + $0xd8] sm:$0xf0]  ;;  %v1936_v29 = vld [vmem:[#allocation5 + $0x2cc] sm:$0xf] }
  0x49   :  { %v1661_v31 = vor.u32 %v1938_v23, %v1660_v22  ;;  %v1868_v36 = vld [vmem:[#allocation5 + $0xac] sm:$0xf]  ;;  %v1390_v37 = vld [vmem:[#allocation5 + $0xb8] sm:$0xf0]  ;;  %v1596_v9 = vld [vmem:[#allocation5 + $0x248] sm:$0xf] }
  0x4a   :  { %750 = vmatpush.bf16.msrb.mxu0 %v1481_v32  ;;  %v1644_v32 = vld [vmem:[#allocation5 + $0x2a8] sm:$0xf]  ;;  %v1900_v39 = vld [vmem:[#allocation5 + $0x1ac] sm:$0xf]  ;;  %v1518_v40 = vld [vmem:[#allocation5 + $0x1b8] sm:$0xf0] }
  0x4b   :  { %763 = vmatpush.bf16.msrb.mxu1 %v1609_v33  ;;  %v1409_v33 = vor.u32 %v1872_v24, %v1406_v26  ;;  %v1932_v41 = vld [vmem:[#allocation5 + $0x2ac] sm:$0xf]  ;;  %v1646_v42 = vld [vmem:[#allocation5 + $0x2b8] sm:$0xf0]  ;;  %v1645_v43 = vor.u32 %v1934_v35, %v1644_v32  ;;  %v1918_v22 = vld [vmem:[#allocation5 + $0x234] sm:$0xf0] }
  0x4c   :  { %776 = vmatpush.bf16.msrb.mxu2 %v1357_v34  ;;  %789 = vmatpush.bf16.msrb.mxu3 %v1485_v38  ;;  %v1537_v34 = vor.u32 %v1904_v27, %v1534_v28  ;;  %v1665_v38 = vor.u32 %v1936_v29, %v1662_v30  ;;  %v1864_v48 = vld [vmem:[#allocation5 + $0x8c] sm:$0xf]  ;;  %v1649_v49 = vor.u32 %v1932_v41, %v1646_v42  ;;  %v1502_v52 = vld [vmem:[#allocation5 + $0x198] sm:$0xf0]  ;;  %s1284_s4 = sshll.u32 %s2166_s2, 4  ;;  %s1286_s21 = sshll.u32 %s2244_s5, 4  ;;  %s1285_s4 = int_to_ptr.vmem [resolvable:$true] %s1284_s4  ;;  %s1287_s21 = int_to_ptr.hbm [resolvable:$true] %s1286_s21 }
  0x4d   :  { %v1896_v51 = vld [vmem:[#allocation5 + $0x18c] sm:$0xf]  ;;  %v1630_v54 = vld [vmem:[#allocation5 + $0x298] sm:$0xf0] }
  0x4e   :  { %751 = vmatpush.bf16.msrb.mxu0 %v1465_v44  ;;  %v1393_v44 = vor.u32 %v1868_v36, %v1390_v37  ;;  %v1928_v53 = vld [vmem:[#allocation5 + $0x28c] sm:$0xf]  ;;  %v1505_v60 = vor.u32 %v1896_v51, %v1502_v52  ;;  %v1358_v1 = vld [vmem:[#allocation5 + $0x78] sm:$0xf0]  ;;  %v1945_v51 = vld [vmem:[#allocation7 + $0x10] sm:$0xff] }
  0x4f   :  { %764 = vmatpush.bf16.msrb.mxu1 %v1593_v45  ;;  %v1521_v45 = vor.u32 %v1900_v39, %v1518_v40  ;;  %v1633_v0 = vor.u32 %v1928_v53, %v1630_v54  ;;  %v1892_v2 = vld [vmem:[#allocation5 + $0x16c] sm:$0xf]  ;;  %v1614_v5 = vld [vmem:[#allocation5 + $0x278] sm:$0xf0]  ;;  %v1957_v54 = vld [vmem:[#allocation7 + $0x70] sm:$0xff] }
  0x50   :  { %777 = vmatpush.bf16.msrb.mxu2 %v1341_v46  ;;  %790 = vmatpush.bf16.msrb.mxu3 %v1469_v50  ;;  %v1628_v46 = vld [vmem:[#allocation5 + $0x288] sm:$0xf]  ;;  %v1374_v50 = vld [vmem:[#allocation5 + $0x98] sm:$0xf0]  ;;  %v1924_v4 = vld [vmem:[#allocation5 + $0x26c] sm:$0xf] }
  0x51   :  { %v1629_v56 = vor.u32 %v1930_v47, %v1628_v46  ;;  %v1856_v11 = vld [vmem:[#allocation5 + $0x4c] sm:$0xf]  ;;  %v1617_v12 = vor.u32 %v1924_v4, %v1614_v5  ;;  %v1342_v13 = vld [vmem:[#allocation5 + $0x58] sm:$0xf0]  ;;  %v1949_v47 = vld [vmem:[#allocation7 + $0x30] sm:$0xff] }
  0x52   :  { %752 = vmatpush.bf16.msrb.mxu0 %v1449_v57  ;;  %v1377_v57 = vor.u32 %v1864_v48, %v1374_v50  ;;  %v1920_v16 = vld [vmem:[#allocation5 + $0x24c] sm:$0xf]  ;;  %v1598_v17 = vld [vmem:[#allocation5 + $0x258] sm:$0xf0]  ;;  %v1953_v4 = vld [vmem:[#allocation7 + $0x50] sm:$0xff] }
  0x53   :  { %765 = vmatpush.bf16.msrb.mxu1 %v1577_v62  ;;  %v1926_v62 = vld [vmem:[#allocation5 + $0x274] sm:$0xf0]  ;;  %v1852_v23 = vld [vmem:[#allocation5 + $0x2c] sm:$0xf]  ;;  %v1601_v24 = vor.u32 %v1920_v16, %v1598_v17  ;;  %v1454_v27 = vld [vmem:[#allocation5 + $0x138] sm:$0xf0] }
  0x54   :  { %778 = vmatpush.bf16.msrb.mxu2 %v1325_v63  ;;  %791 = vmatpush.bf16.msrb.mxu3 %v1453_v3  ;;  %v1860_v63 = vld [vmem:[#allocation5 + $0x6c] sm:$0xf]  ;;  %v1486_v3 = vld [vmem:[#allocation5 + $0x178] sm:$0xf0]  ;;  %v1613_v6 = vor.u32 %v1926_v62, %v1612_v61 }
  0x55   :  { %v1361_v7 = vor.u32 %v1860_v63, %v1358_v1  ;;  %v1489_v8 = vor.u32 %v1892_v2, %v1486_v3  ;;  %v1884_v26 = vld [vmem:[#allocation5 + $0x12c] sm:$0xf]  ;;  %v1582_v29 = vld [vmem:[#allocation5 + $0x238] sm:$0xf0] }
  0x56   :  { %753 = vmatpush.bf16.msrb.mxu0 %v1433_v10  ;;  %v1922_v10 = vld [vmem:[#allocation5 + $0x254] sm:$0xf0]  ;;  %v1916_v28 = vld [vmem:[#allocation5 + $0x22c] sm:$0xf]  ;;  %v1457_v32 = vor.u32 %v1884_v26, %v1454_v27  ;;  %v1310_v37 = vld [vmem:[#allocation5 + $0x18] sm:$0xf0] }
  0x57   :  { %766 = vmatpush.bf16.msrb.mxu1 %v1561_v14  ;;  %v1888_v14 = vld [vmem:[#allocation5 + $0x14c] sm:$0xf]  ;;  %v1585_v36 = vor.u32 %v1916_v28, %v1582_v29  ;;  %v1438_v39 = vld [vmem:[#allocation5 + $0x118] sm:$0xf0] }
  0x58   :  { %779 = vmatpush.bf16.msrb.mxu2 %v1309_v15  ;;  %792 = vmatpush.bf16.msrb.mxu3 %v1437_v18  ;;  %v1470_v15 = vld [vmem:[#allocation5 + $0x158] sm:$0xf0]  ;;  %v1597_v18 = vor.u32 %v1922_v10, %v1596_v9  ;;  %v1848_v35 = vld [vmem:[#allocation5 + $0xc] sm:$0xf] }
  0x59   :  { %754 = vmatmul.bf16.vlgmr.msrb.gmra.mxu0 %v2216_v59  ;;  %v1912_v40 = vld [vmem:[#allocation5 + $0x20c] sm:$0xf]  ;;  %v1566_v41 = vld [vmem:[#allocation5 + $0x218] sm:$0xf0] }
  0x5a   :  { %798 = vmatpush.bf16.msra.mxu0 %v1677_v19  ;;  %767 = vmatmul.bf16.vlgmr.msrb.gmra.mxu1 %v2212_v55  ;;  %v1345_v19 = vor.u32 %v1856_v11, %v1342_v13  ;;  %v1950_v46 = vld [vmem:[#allocation7 + $0x38] sm:$0xff]  ;;  %v1948_v48 = vld [vmem:[#allocation7 + $0x28] sm:$0xff]  ;;  %v1951_v13 = vld [vmem:[#allocation7 + $0x40] sm:$0xff] }
  0x5b   :  { %811 = vmatpush.bf16.msra.mxu1 %v1425_v20  ;;  %780 = vmatmul.bf16.vlgmr.msrb.gmra.mxu2 %v2214_v58  ;;  %v1473_v20 = vor.u32 %v1888_v14, %v1470_v15  ;;  %v1946_v50 = vld [vmem:[#allocation7 + $0x18] sm:$0xff]  ;;  %v1944_v53 = vld [vmem:[#allocation7 + $0x8] sm:$0xff]  ;;  %v1965_v15 = vld [vmem:[#allocation7 + $0xb0] sm:$0xff] }
  0x5c   :  { %824 = vmatpush.bf16.msra.mxu2 %v1553_v21  ;;  %837 = vmatpush.bf16.msra.mxu3 %v1681_v25  ;;  %v1580_v21 = vld [vmem:[#allocation5 + $0x228] sm:$0xf]  ;;  %v1326_v25 = vld [vmem:[#allocation5 + $0x38] sm:$0xf0] }
  0x5d   :  { %793 = vmatmul.bf16.vlgmr.msrb.gmra.mxu3 %v2216_v59  ;;  %v1581_v30 = vor.u32 %v1918_v22, %v1580_v21  ;;  %v1958_v52 = vld [vmem:[#allocation7 + $0x78] sm:$0xff]  ;;  %v1952_v9 = vld [vmem:[#allocation7 + $0x48] sm:$0xff] }
  0x5e   :  { %799 = vmatpush.bf16.msra.mxu0 %v1661_v31  ;;  %v1329_v31 = vor.u32 %v1852_v23, %v1326_v25  ;;  %v1966_v11 = vld [vmem:[#allocation7 + $0xb8] sm:$0xff]  ;;  %v1963_v23 = vld [vmem:[#allocation7 + $0xa0] sm:$0xff]  ;;  %v1972_v29 = vld [vmem:[#allocation7 + $0xe8] sm:$0xff] }
  0x5f   :  { %812 = vmatpush.bf16.msra.mxu1 %v1409_v33  ;;  %v1564_v33 = vld [vmem:[#allocation5 + $0x208] sm:$0xf]  ;;  %v1974_v16 = vld [vmem:[#allocation7 + $0xf8] sm:$0xff] }
  0x60   :  { %825 = vmatpush.bf16.msra.mxu2 %v1537_v34  ;;  %838 = vmatpush.bf16.msra.mxu3 %v1665_v38  ;;  %v1914_v34 = vld [vmem:[#allocation5 + $0x214] sm:$0xf0]  ;;  %v1880_v38 = vld [vmem:[#allocation5 + $0x10c] sm:$0xf] }
  0x61   :  { %v1565_v42 = vor.u32 %v1914_v34, %v1564_v33  ;;  %v1962_v28 = vld [vmem:[#allocation7 + $0x98] sm:$0xff]  ;;  %v1971_v33 = vld [vmem:[#allocation7 + $0xe0] sm:$0xff] }
  0x62   :  { %800 = vmatpush.bf16.msra.mxu0 %v1645_v43  ;;  %v1313_v43 = vor.u32 %v1848_v35, %v1310_v37 }
  0x63   :  { %813 = vmatpush.bf16.msra.mxu1 %v1393_v44  ;;  %v1441_v44 = vor.u32 %v1880_v38, %v1438_v39  ;;  %v1960_v39 = vld [vmem:[#allocation7 + $0x88] sm:$0xff] }
  0x64   :  { %826 = vmatpush.bf16.msra.mxu2 %v1521_v45  ;;  %839 = vmatpush.bf16.msra.mxu3 %v1649_v49  ;;  %v1569_v45 = vor.u32 %v1912_v40, %v1566_v41  ;;  %v1947_v49 = vld [vmem:[#allocation7 + $0x20] sm:$0xff]  ;;  %v1970_v40 = vld [vmem:[#allocation7 + $0xd8] sm:$0xff] }
  0x65   :  { %v1959_v41 = vld [vmem:[#allocation7 + $0x80] sm:$0xff] }
  0x66   :  { %801 = vmatpush.bf16.msra.mxu0 %v1629_v56  ;;  %v1956_v56 = vld [vmem:[#allocation7 + $0x68] sm:$0xff] }
  0x67   :  { %814 = vmatpush.bf16.msra.mxu1 %v1377_v57  ;;  %v1955_v57 = vld [vmem:[#allocation7 + $0x60] sm:$0xff] }
  0x68   :  { %827 = vmatpush.bf16.msra.mxu2 %v1505_v60  ;;  %840 = vmatpush.bf16.msra.mxu3 %v1633_v0  ;;  %v1954_v0 = vld [vmem:[#allocation7 + $0x58] sm:$0xff] }
  0x6a   :  { %802 = vmatpush.bf16.msra.mxu0 %v1613_v6 }
  0x6b   :  { %815 = vmatpush.bf16.msra.mxu1 %v1361_v7 }
  0x6c   :  { %828 = vmatpush.bf16.msra.mxu2 %v1489_v8  ;;  %841 = vmatpush.bf16.msra.mxu3 %v1617_v12 }
  0x6e   :  { %803 = vmatpush.bf16.msra.mxu0 %v1597_v18  ;;  %v1964_v18 = vld [vmem:[#allocation7 + $0xa8] sm:$0xff] }
  0x6f   :  { %816 = vmatpush.bf16.msra.mxu1 %v1345_v19 }
  0x70   :  { %829 = vmatpush.bf16.msra.mxu2 %v1473_v20  ;;  %842 = vmatpush.bf16.msra.mxu3 %v1601_v24  ;;  %v1973_v24 = vld [vmem:[#allocation7 + $0xf0] sm:$0xff] }
  0x72   :  { %804 = vmatpush.bf16.msra.mxu0 %v1581_v30 }
  0x73   :  { %817 = vmatpush.bf16.msra.mxu1 %v1329_v31 }
  0x74   :  { %830 = vmatpush.bf16.msra.mxu2 %v1457_v32  ;;  %843 = vmatpush.bf16.msra.mxu3 %v1585_v36  ;;  %v1961_v32 = vld [vmem:[#allocation7 + $0x90] sm:$0xff] }
  0x76   :  { %805 = vmatpush.bf16.msra.mxu0 %v1565_v42  ;;  %v1969_v42 = vld [vmem:[#allocation7 + $0xd0] sm:$0xff] }
  0x77   :  { %818 = vmatpush.bf16.msra.mxu1 %v1313_v43 }
  0x78   :  { %831 = vmatpush.bf16.msra.mxu2 %v1441_v44  ;;  %844 = vmatpush.bf16.msra.mxu3 %v1569_v45 }
  0x79   :  { %806 = vmatmul.bf16.vlgmr.msra.gmra.mxu0 %v2212_v55 }
  0x7a   :  { %1138 = vmatpush.bf16.msrb.mxu0 %v1950_v46  ;;  %819 = vmatmul.bf16.vlgmr.msra.gmra.mxu1 %v2214_v58  ;;  %v1943_v58 = vld [vmem:[#allocation7] sm:$0xff] }
  0x7b   :  { %832 = vmatmul.bf16.vlgmr.msra.gmra.mxu2 %v2216_v59  ;;  %845 = vmatmul.bf16.vlgmr.msra.gmra.mxu3 %v2212_v55  ;;  %v2230_v59 = vld [vmem:[#allocation10] sm:$0xf] }
  0x7c   :  { %1151 = vmatpush.bf16.msrb.mxu1 %v1958_v52  ;;  %v195_v55 = vperm.slane %v2230_v59, 0  ;;  %1164 = vmatpush.bf16.msrb.mxu2 %v1966_v11  ;;  %v196_v21 = vperm.slane %v2230_v59, 1 }
  0x7d   :  { %1177 = vmatpush.bf16.msrb.mxu3 %v1974_v16  ;;  %v1982_v16 = vld [vmem:[#allocation8 + $0x38] sm:$0xff] }
  0x7e   :  { %1139 = vmatpush.bf16.msrb.mxu0 %v1949_v47  ;;  %v1968_v47 = vld [vmem:[#allocation7 + $0xc8] sm:$0xff] }
  0x80   :  { %1152 = vmatpush.bf16.msrb.mxu1 %v1957_v54  ;;  %1165 = vmatpush.bf16.msrb.mxu2 %v1965_v15 }
  0x81   :  { %1178 = vmatpush.bf16.msrb.mxu3 %v1973_v24  ;;  %v1977_v24 = vld [vmem:[#allocation8 + $0x10] sm:$0xff] }
  0x82   :  { %1140 = vmatpush.bf16.msrb.mxu0 %v1948_v48 }
  0x84   :  { %1153 = vmatpush.bf16.msrb.mxu1 %v1956_v56  ;;  %1166 = vmatpush.bf16.msrb.mxu2 %v1964_v18 }
  0x85   :  { %1179 = vmatpush.bf16.msrb.mxu3 %v1972_v29 }
  0x86   :  { %1141 = vmatpush.bf16.msrb.mxu0 %v1947_v49 }
  0x88   :  { %1154 = vmatpush.bf16.msrb.mxu1 %v1955_v57  ;;  %1167 = vmatpush.bf16.msrb.mxu2 %v1963_v23  ;;  %v1978_v23 = vld [vmem:[#allocation8 + $0x18] sm:$0xff] }
  0x89   :  { %1180 = vmatpush.bf16.msrb.mxu3 %v1971_v33 }
  0x8a   :  { %1142 = vmatpush.bf16.msrb.mxu0 %v1946_v50  ;;  %v197_v50 = vperm.slane %v2230_v59, 2 }
  0x8c   :  { %1155 = vmatpush.bf16.msrb.mxu1 %v1954_v0  ;;  %1168 = vmatpush.bf16.msrb.mxu2 %v1962_v28 }
  0x8d   :  { %1181 = vmatpush.bf16.msrb.mxu3 %v1970_v40 }
  0x8e   :  { %1143 = vmatpush.bf16.msrb.mxu0 %v1945_v51  ;;  %v1967_v51 = vld [vmem:[#allocation7 + $0xc0] sm:$0xff] }
  0x90   :  { %1156 = vmatpush.bf16.msrb.mxu1 %v1953_v4  ;;  %1169 = vmatpush.bf16.msrb.mxu2 %v1961_v32 }
  0x91   :  { %1182 = vmatpush.bf16.msrb.mxu3 %v1969_v42  ;;  %v1994_v42 = vld [vmem:[#allocation10 + $0x5] ss:$0 sm:$0xff] }
  0x92   :  { %1144 = vmatpush.bf16.msrb.mxu0 %v1944_v53 }
  0x94   :  { %1157 = vmatpush.bf16.msrb.mxu1 %v1952_v9  ;;  %1170 = vmatpush.bf16.msrb.mxu2 %v1960_v39 }
  0x95   :  { %1183 = vmatpush.bf16.msrb.mxu3 %v1968_v47 }
  0x96   :  { %1145 = vmatpush.bf16.msrb.mxu0 %v1943_v58  ;;  %v198_v58 = vperm.slane %v2230_v59, 3 }
  0x98   :  { %1158 = vmatpush.bf16.msrb.mxu1 %v1951_v13  ;;  %1171 = vmatpush.bf16.msrb.mxu2 %v1959_v41 }
  0x99   :  { %1184 = vmatpush.bf16.msrb.mxu3 %v1967_v51 }
  0x9a   :  { %1265 = vmatpush.bf16.msra.mxu0 %v1982_v16 }
  0xb6   :  { %v703_v60 = vpop.f32.mrf.mxu0 }
  0xb7   :  { %v716_v61 = vpop.f32.mrf.mxu1  ;;  %v704_v62 = vadd.f32 %v703_v60, %v195_v55 }
  0xb9   :  { %v717_v63 = vadd.f32 %v716_v61, %v704_v62 }
  0xbe   :  { %v729_v1 = vpop.f32.mrf.mxu2  ;;  %v705_v6 = vpop.f32.mrf.mxu0 }
  0xbf   :  { %v730_v2 = vadd.f32 %v729_v1, %v717_v63  ;;  %v718_v7 = vpop.f32.mrf.mxu1 }
  0xc0   :  { %v742_v3 = vpop.f32.mrf.mxu3 }
  0xc1   :  { %v854_v5 = vmin.f32 %v730_v2, 0.0  ;;  %vm850_vm0 = vcmp.gt.f32.partialorder %v730_v2, 0.0  ;;  %v743_v22 = vadd.f32 %v742_v3, %v196_v21 }
  0xc3   :  { %v858_v8 = vmul.f32 1.442695, %v854_v5 }
  0xc5   :  { %1995 = vpow2.f32 %v858_v8 }
  0xc6   :  { %v731_v10 = vpop.f32.mrf.mxu2 }
  0xc8   :  { %v744_v12 = vpop.f32.mrf.mxu3 }
  0xcb   :  { %v1996_v14 = vpop.eup %1995 }
  0xcc   :  { %v1682_v17 = vadd.f32 -1.0, %v1996_v14 }
  0xce   :  { %v870_v19 = vsel %vm850_vm0, %v730_v2, %v1682_v17 }
  0xcf   :  { %v874_v20 = vpack.c.bf16 %v870_v19, %v870_v19  ;;  %v1981_v19 = vld [vmem:[#allocation8 + $0x30] sm:$0xff] }
  0xd0   :  { %1266 = vmatpush.bf16.msra.mxu0 %v1981_v19 }
  0xd1   :  { %1146 = vmatmul.bf16.vlgmr.msrb.gmra.mxu0 %v874_v20  ;;  %v1980_v20 = vld [vmem:[#allocation8 + $0x28] sm:$0xff] }
  0xd4   :  { %1267 = vmatpush.bf16.msra.mxu0 %v1980_v20 }
  0xd6   :  { %v755_v25 = vpop.f32.mrf.mxu0 }
  0xd7   :  { %v756_v26 = vadd.f32 %v755_v25, %v743_v22  ;;  %v768_v27 = vpop.f32.mrf.mxu1  ;;  %v1979_v22 = vld [vmem:[#allocation8 + $0x20] sm:$0xff]  ;;  %v1976_v25 = vld [vmem:[#allocation8 + $0x8] sm:$0xff] }
  0xd8   :  { %1268 = vmatpush.bf16.msra.mxu0 %v1979_v22 }
  0xd9   :  { %v769_v30 = vadd.f32 %v768_v27, %v756_v26  ;;  %v1975_v26 = vld [vmem:[#allocation8] sm:$0xff] }
  0xda   :  { %v1993_v27 = vld [vmem:[#allocation10 + $0x4] ss:$0 sm:$0xff] }
  0xdb   :  { %v855_v31 = vmin.f32 %v769_v30, 0.0  ;;  %vm851_vm1 = vcmp.gt.f32.partialorder %v769_v30, 0.0 }
  0xdc   :  { %1269 = vmatpush.bf16.msra.mxu0 %v1978_v23 }
  0xdd   :  { %v860_v34 = vmul.f32 1.442695, %v855_v31 }
  0xde   :  { %v781_v35 = vpop.f32.mrf.mxu2  ;;  %v757_v37 = vpop.f32.mrf.mxu0 }
  0xdf   :  { %1997 = vpow2.f32 %v860_v34  ;;  %v770_v38 = vpop.f32.mrf.mxu1  ;;  %v782_v52 = vadd.f32 %v781_v35, %v197_v50 }
  0xe0   :  { %v794_v36 = vpop.f32.mrf.mxu3  ;;  %1270 = vmatpush.bf16.msra.mxu0 %v1977_v24 }
  0xe1   :  { %v795_v53 = vadd.f32 %v794_v36, %v782_v52 }
  0xe4   :  { %1271 = vmatpush.bf16.msra.mxu0 %v1976_v25 }
  0xe5   :  { %v1998_v43 = vpop.eup %1997 }
  0xe6   :  { %v783_v44 = vpop.f32.mrf.mxu2  ;;  %v1683_v45 = vadd.f32 -1.0, %v1998_v43 }
  0xe8   :  { %v796_v46 = vpop.f32.mrf.mxu3  ;;  %v871_v48 = vsel %vm851_vm1, %v769_v30, %v1683_v45  ;;  %1272 = vmatpush.bf16.msra.mxu0 %v1975_v26 }
  0xe9   :  { %v875_v49 = vpack.c.bf16 %v871_v48, %v871_v48 }
  0xeb   :  { %1159 = vmatmul.bf16.vlgmr.msrb.gmra.mxu1 %v875_v49 }
  0xf6   :  { %v807_v54 = vpop.f32.mrf.mxu0 }
  0xf7   :  { %v808_v56 = vadd.f32 %v807_v54, %v795_v53  ;;  %v820_v55 = vpop.f32.mrf.mxu1 }
  0xf8   :  { %v821_v60 = vadd.f32 %v820_v55, %v198_v58 }
  0xf9   :  { %v856_v57 = vmin.f32 %v808_v56, 0.0  ;;  %vm852_vm2 = vcmp.gt.f32.partialorder %v808_v56, 0.0 }
  0xfb   :  { %v862_v61 = vmul.f32 1.442695, %v856_v57 }
  0xfd   :  { %1999 = vpow2.f32 %v862_v61 }
  0xfe   :  { %v833_v62 = vpop.f32.mrf.mxu2  ;;  %v846_v0 = vpop.f32.mrf.mxu3 }
  0xff   :  { %v834_v63 = vadd.f32 %v833_v62, %v821_v60  ;;  %v809_v1 = vpop.f32.mrf.mxu0  ;;  %v822_v2 = vpop.f32.mrf.mxu1 }
 0x101   :  { %v847_v3 = vadd.f32 %v846_v0, %v834_v63 }
 0x103   :  { %v857_v4 = vmin.f32 %v847_v3, 0.0  ;;  %v2000_v5 = vpop.eup %1999  ;;  %vm853_vm3 = vcmp.gt.f32.partialorder %v847_v3, 0.0 }
 0x104   :  { %v1684_v6 = vadd.f32 -1.0, %v2000_v5 }
 0x105   :  { %v864_v7 = vmul.f32 1.442695, %v857_v4 }
 0x106   :  { %v835_v8 = vpop.f32.mrf.mxu2  ;;  %v872_v9 = vsel %vm852_vm2, %v808_v56, %v1684_v6  ;;  %v848_v59 = vpop.f32.mrf.mxu3 }
 0x107   :  { %2001 = vpow2.f32 %v864_v7  ;;  %v876_v10 = vpack.c.bf16 %v872_v9, %v872_v9 }
 0x109   :  { %1172 = vmatmul.bf16.vlgmr.msrb.gmra.mxu2 %v876_v10 }
 0x10d   :  { %v2002_v11 = vpop.eup %2001 }
 0x10e   :  { %v1685_v12 = vadd.f32 -1.0, %v2002_v11 }
 0x110   :  { %v873_v13 = vsel %vm853_vm3, %v847_v3, %v1685_v12 }
 0x111   :  { %v877_v14 = vpack.c.bf16 %v873_v13, %v873_v13 }
 0x113   :  { %1185 = vmatmul.bf16.vlgmr.msrb.gmra.mxu3 %v877_v14 }
 0x14e   :  { %v1147_v15 = vpop.f32.mrf.mxu0 }
 0x14f   :  { %v1148_v29 = vadd.f32 %v1993_v27, %v1147_v15 }
 0x156   :  { %v1149_v17 = vpop.f32.mrf.mxu0 }
 0x168   :  { %v1160_v18 = vpop.f32.mrf.mxu1 }
 0x169   :  { %v1161_v30 = vadd.f32 %v1160_v18, %v1148_v29 }
 0x170   :  { %v1162_v21 = vpop.f32.mrf.mxu1 }
 0x18c   :  { %v1173_v28 = vpop.f32.mrf.mxu2 }
 0x18d   :  { %v1174_v31 = vadd.f32 %v1173_v28, %v1161_v30 }
 0x194   :  { %v1175_v32 = vpop.f32.mrf.mxu2 }
 0x196   :  { %v1186_v33 = vpop.f32.mrf.mxu3 }
 0x197   :  { %v1187_v34 = vadd.f32 %v1186_v33, %v1174_v31 }
 0x199   :  { %v1191_v35 = vmin.f32 %v1187_v34, 0.0  ;;  %vm1190_vm4 = vcmp.gt.f32.partialorder %v1187_v34, 0.0 }
 0x19b   :  { %v1192_v36 = vmul.f32 1.442695, %v1191_v35 }
 0x19d   :  { %2003 = vpow2.f32 %v1192_v36 }
 0x19e   :  { %v1188_v37 = vpop.f32.mrf.mxu3 }
 0x1a3   :  { %v2004_v38 = vpop.eup %2003 }
 0x1a4   :  { %v1814_v39 = vadd.f32 -1.0, %v2004_v38 }
 0x1a6   :  { %v1195_v40 = vsel %vm1190_vm4, %v1187_v34, %v1814_v39 }
 0x1a7   :  { %v1196_v41 = vpack.c.bf16 %v1195_v40, %v1195_v40 }
 0x1a9   :  { %1273 = vmatmul.bf16.vlgmr.msra.gmra.mxu0 %v1196_v41 }
 0x226   :  { %v1274_v43 = vpop.f32.mrf.mxu0 }
 0x227   :  { %v1275_v44 = vadd.f32 %v1994_v42, %v1274_v43 }
 0x229   :  { %1278 = vst [vmem:[#allocation11] sm:$0xff] %v1275_v44 }
 0x22a   :  { %1289 = dma.vmem_to_hbm [thread:$0]  %s1285_s4, 128, %s1287_s21, [#allocation4]  }
 0x22e   :  { %v1276_v45 = vpop.f32.mrf.mxu0 }
 0x22f   :  { %2155 = dma.done.wait [#allocation4], 128  }
 0x230   :  { %2156 = vsyncadd [#allocation4], 4294967168 }
 0x231   :  { %1294 = vsyncpa [#allocation3], 1 }
 0x232   :  { %1295 = vsyncpa [#allocation6], 1 }
 0x233   :  { %1296 = vsyncpa [#allocation9], 1 }
 0x234   :  { %1297 = vsyncpa [#allocation4], 1 }

</bundles_post_ra>
